<compile_context>
chip_gen: v5e
topology: v5e:2x2
jax: 0.10.0
libtpu: 0.0.40
codegen_flags: <defaults>
</compile_context>

<pallas_src>
import jax
import jax.numpy as jnp
from jax import lax
from jax.experimental import pallas as pl
from jax.experimental.pallas import tpu as pltpu


# Packed fc2/fc3 scalars (float32, SMEM):
#   s[0:4] = w2 row-major (PyTorch (out, in): w2_00, w2_01, w2_10, w2_11)
#   s[4:6] = b2
#   s[6:8] = w3 row-major (w3_00, w3_01)
#   s[8]   = b3
def mlp_kernel(x_ref, w1_ref, b1_ref, s_ref, o_ref):
    # fc1 on the MXU, contracting D of both operands -> (2, TB) f32 with the
    # batch on the lane axis.  N = TB fills the MXU lanes; only M=2 is padding.
    h1 = lax.dot_general(
        w1_ref[...], x_ref[...],
        dimension_numbers=(((1,), (1,)), ((), ())),
        preferred_element_type=jnp.float32)                      # (2, TB)

    # fc1 bias + ReLU on the full (2, TB) block in a single VPU pass.
    h1 = jnp.maximum(h1 + b1_ref[...], 0.0)                      # (2, TB)
    h1a = h1[0:1, :]                                             # (1, TB)
    h1b = h1[1:2, :]                                             # (1, TB)

    # fc2 (2x2) + ReLU as VPU broadcast-FMAs with SMEM scalars.
    h2a = jnp.maximum(s_ref[0] * h1a + s_ref[1] * h1b + s_ref[4], 0.0)
    h2b = jnp.maximum(s_ref[2] * h1a + s_ref[3] * h1b + s_ref[5], 0.0)

    # fc3 (2x1) as one more FMA; clamp so exp(-h3) stays finite in f32.
    h3 = s_ref[6] * h2a + s_ref[7] * h2b + s_ref[8]              # (1, TB)
    h3 = jnp.maximum(h3, -30.0)

    # sigmoid: exp and approximate reciprocal both run on the EUP slot.
    o_ref[...] = pl.reciprocal(1.0 + jnp.exp(-h3), approx=True)


_TB_SWEEP = (16384, 8192, 4096, 2048, 1024, 512, 256, 128)


def _round_up(n, m):
    return (n + m - 1) // m * m


def _pick_block(batch, max_tb):
    # Largest tile (<= max_tb) that still yields a >=2-step grid, so the
    # software pipeline (and v7x's second TensorCore) always has work.
    for tb in _TB_SWEEP:
        if tb <= max_tb and tb < batch:
            return tb
    # Batch smaller than the smallest legal multi-step tile (128 lanes for the
    # lane-dense output): one padded block (block == full array is legal).
    return _round_up(batch, 8)


def mlp_forward(x, params, *, block_batch=None, max_block_batch=8192,
                cast_x_to_bf16=False):
    """x: (B, D).  params use PyTorch nn.Linear layouts (out, in)."""
    B, D = x.shape

    # bf16 x halves HBM traffic for the only large operand; only the MXU
    # consumes it and the VPU/EUP chain stays on the f32 matmul output.
    if cast_x_to_bf16 and x.dtype != jnp.bfloat16:
        x = x.astype(jnp.bfloat16)
    mm_dtype = x.dtype

    w1 = params["w1"].astype(mm_dtype)                           # (2, D)
    b1 = params["b1"].reshape(2, 1).astype(jnp.float32)          # (2, 1)
    scal = jnp.concatenate([
        params["w2"].reshape(-1),                                # 4 (row-major)
        params["b2"].reshape(-1),                                # 2
        params["w3"].reshape(-1),                                # 2
        params["b3"].reshape(-1),                                # 1
    ]).astype(jnp.float32)                                       # (9,)

    if (block_batch is not None and block_batch >= 128
            and block_batch % 128 == 0):
        tb = min(block_batch, max_block_batch)
    else:
        tb = _pick_block(B, max_block_batch)

    n_steps = pl.cdiv(B, tb)
    b_pad = n_steps * tb
    if b_pad != B:                                               # pad, never shrink grid
        x = jnp.pad(x, ((0, b_pad - B), (0, 0)))

    # VMEM accounting WITH lane padding: (tb, D) block occupies tb x 128 lanes.
    n_xbuf = 3 if n_steps >= 3 else 2
    vmem_est = (n_xbuf * tb * 128 * x.dtype.itemsize             # x buffers
                + 2 * 8 * tb * 4                                 # out buffers (sublane-padded)
                + (1 << 20))                                     # w1/b1/scalars/slack
    vmem_limit = int(min(64 << 20, max(32 << 20, 2 * vmem_est)))

    if n_steps >= 3:
        x_spec = pl.BlockSpec((tb, D), lambda i: (i, 0),
                              pipeline_mode=pl.Buffered(3))
    else:
        x_spec = pl.BlockSpec((tb, D), lambda i: (i, 0))

    cost = pl.CostEstimate(
        flops=4 * b_pad * D + 12 * b_pad,
        transcendentals=2 * b_pad,
        bytes_accessed=b_pad * D * x.dtype.itemsize + b_pad * 4 + (2 * D + 11) * 4)

    out = pl.pallas_call(
        mlp_kernel,
        out_shape=jax.ShapeDtypeStruct((1, b_pad), jnp.float32),  # lane-dense
        grid=(n_steps,),
        in_specs=[
            x_spec,                                               # x batch tile
            pl.BlockSpec((2, D), lambda i: (0, 0)),               # w1, VMEM-resident
            pl.BlockSpec((2, 1), lambda i: (0, 0)),               # b1, VMEM-resident
            pl.BlockSpec(memory_space=pltpu.MemorySpace.SMEM),    # packed scalars
        ],
        out_specs=pl.BlockSpec((1, tb), lambda i: (0, i)),
        compiler_params=pltpu.CompilerParams(
            dimension_semantics=("parallel",),                    # 2nd TC on v7x
            vmem_limit_bytes=vmem_limit),
        cost_estimate=cost,
    )(x, w1, b1, scal)

    return out[0, :B].reshape(B, 1)                               # drop pad, free reshape


def init_params(key, input_dim):
    """Deterministic init mirroring nn.Linear (uniform +/- 1/sqrt(fan_in)),
    stored in PyTorch (out_features, in_features) layout."""
    ks = jax.random.split(key, 6)

    def unif(k, shape, fan_in):
        bound = 1.0 / jnp.sqrt(float(fan_in))
        return jax.random.uniform(k, shape, jnp.float32, -bound, bound)

    return {
        "w1": unif(ks[0], (2, input_dim), input_dim),
        "b1": unif(ks[1], (2,), input_dim),
        "w2": unif(ks[2], (2, 2), 2),
        "b2": unif(ks[3], (2,), 2),
        "w3": unif(ks[4], (1, 2), 2),
        "b3": unif(ks[5], (1,), 2),
    }


def mlp_reference(x, p):
    h1 = jnp.maximum(x @ p["w1"].T + p["b1"], 0.0)
    h2 = jnp.maximum(h1 @ p["w2"].T + p["b2"], 0.0)
    return jax.nn.sigmoid(h2 @ p["w3"].T + p["b3"])


if __name__ == "__main__":
    key = jax.random.PRNGKey(0)
    k_x, k_p = jax.random.split(key)

    batch, input_dim = 256, 32
    x = jax.random.normal(k_x, (batch, input_dim), dtype=jnp.float32)
    params = init_params(k_p, input_dim)
    ref = mlp_reference(x, params)

    # f32 path; auto tile -> tb=128, grid=(2,): exercises tiling, resident
    # weights and the lane-dense output.
    out = jax.block_until_ready(mlp_forward(x, params))
    assert out.shape == (batch, 1)
    # Tolerance covers the EUP approximate reciprocal in the sigmoid.
    assert jnp.allclose(out, ref, atol=2e-3, rtol=2e-3), float(
        jnp.max(jnp.abs(out - ref)))

    # Padding path: batch not a tile multiple -> pad to 256, grid=(2,), slice.
    b_small = 200
    out2 = jax.block_until_ready(mlp_forward(x[:b_small], params))
    assert out2.shape == (b_small, 1)
    assert jnp.allclose(out2, ref[:b_small], atol=2e-3, rtol=2e-3)

    # Optional bf16-x path (halves HBM traffic on the bandwidth-bound input).
    out3 = jax.block_until_ready(mlp_forward(x, params, cast_x_to_bf16=True))
    assert out3.shape == (batch, 1)
    assert jnp.allclose(out3, ref, atol=2e-2, rtol=2e-2)

    print("KERNEL_OK")
</pallas_src>

<mosaic_0001>
module attributes {stable_mosaic.version = 11 : i64} {
  func.func @mlp_kernel(%arg0: i32, %arg1: memref<128x32xf32, #tpu.memory_space<vmem>>, %arg2: memref<2x32xf32, #tpu.memory_space<vmem>>, %arg3: memref<2x1xf32, #tpu.memory_space<vmem>>, %arg4: memref<9xf32, #tpu.memory_space<smem>>, %arg5: memref<1x128xf32, #tpu.memory_space<vmem>>) attributes {dimension_semantics = [#tpu.dimension_semantics<parallel>], iteration_bounds = array<i64: 2>, scalar_prefetch = 0 : i64, scratch_operands = 0 : i64, tpu.core_type = #tpu.core_type<tc>, window_params = [{transform_indices = @transform_0, window_bounds = array<i64: 128, 32>}, {pipeline_mode = #tpu.pipeline_mode<synchronous>, transform_indices = @transform_1, window_bounds = array<i64: 2, 32>}, {pipeline_mode = #tpu.pipeline_mode<synchronous>, transform_indices = @transform_2, window_bounds = array<i64: 2, 1>}, {transform_indices = @transform_3, window_bounds = array<i64: 9>}, {transform_indices = @transform_4, window_bounds = array<i64: 1, 128>}]} {
    %c0 = arith.constant 0 : index
    %c0_0 = arith.constant 0 : index
    %0 = vector.load %arg2[%c0, %c0_0] : memref<2x32xf32, #tpu.memory_space<vmem>>, vector<2x32xf32>
    %c0_1 = arith.constant 0 : index
    %c0_2 = arith.constant 0 : index
    %1 = vector.load %arg1[%c0_1, %c0_2] : memref<128x32xf32, #tpu.memory_space<vmem>>, vector<128x32xf32>
    %cst = arith.constant dense<0.000000e+00> : vector<2x128xf32>
    %2 = tpu.matmul %0, %1, %cst {dimension_numbers = #tpu.dot_dimension_numbers<[1], [1], [0], [0], [0, 0, 1, 0], [], []>} : vector<2x32xf32>, vector<128x32xf32>, vector<2x128xf32> -> vector<2x128xf32>
    %c0_3 = arith.constant 0 : index
    %c0_4 = arith.constant 0 : index
    %3 = vector.load %arg3[%c0_3, %c0_4] : memref<2x1xf32, #tpu.memory_space<vmem>>, vector<2x1xf32>
    %4 = vector.broadcast %3 : vector<2x1xf32> to vector<2x128xf32>
    %5 = arith.addf %2, %4 : vector<2x128xf32>
    %cst_5 = arith.constant 0.000000e+00 : f32
    %6 = vector.broadcast %cst_5 : f32 to vector<2x128xf32>
    %7 = arith.maximumf %5, %6 : vector<2x128xf32>
    %8 = vector.extract_strided_slice %7 {offsets = [0, 0], sizes = [1, 128], strides = [1, 1]} : vector<2x128xf32> to vector<1x128xf32>
    %9 = vector.extract_strided_slice %7 {offsets = [1, 0], sizes = [1, 128], strides = [1, 1]} : vector<2x128xf32> to vector<1x128xf32>
    %c0_6 = arith.constant 0 : index
    %10 = memref.load %arg4[%c0_6] : memref<9xf32, #tpu.memory_space<smem>>
    %11 = vector.broadcast %10 : f32 to vector<1x128xf32>
    %12 = arith.mulf %11, %8 : vector<1x128xf32>
    %c1 = arith.constant 1 : index
    %13 = memref.load %arg4[%c1] : memref<9xf32, #tpu.memory_space<smem>>
    %14 = vector.broadcast %13 : f32 to vector<1x128xf32>
    %15 = arith.mulf %14, %9 : vector<1x128xf32>
    %16 = arith.addf %12, %15 : vector<1x128xf32>
    %c4 = arith.constant 4 : index
    %17 = memref.load %arg4[%c4] : memref<9xf32, #tpu.memory_space<smem>>
    %18 = vector.broadcast %17 : f32 to vector<1x128xf32>
    %19 = arith.addf %16, %18 : vector<1x128xf32>
    %cst_7 = arith.constant 0.000000e+00 : f32
    %20 = vector.broadcast %cst_7 : f32 to vector<1x128xf32>
    %21 = arith.maximumf %19, %20 : vector<1x128xf32>
    %c2 = arith.constant 2 : index
    %22 = memref.load %arg4[%c2] : memref<9xf32, #tpu.memory_space<smem>>
    %23 = vector.broadcast %22 : f32 to vector<1x128xf32>
    %24 = arith.mulf %23, %8 : vector<1x128xf32>
    %c3 = arith.constant 3 : index
    %25 = memref.load %arg4[%c3] : memref<9xf32, #tpu.memory_space<smem>>
    %26 = vector.broadcast %25 : f32 to vector<1x128xf32>
    %27 = arith.mulf %26, %9 : vector<1x128xf32>
    %28 = arith.addf %24, %27 : vector<1x128xf32>
    %c5 = arith.constant 5 : index
    %29 = memref.load %arg4[%c5] : memref<9xf32, #tpu.memory_space<smem>>
    %30 = vector.broadcast %29 : f32 to vector<1x128xf32>
    %31 = arith.addf %28, %30 : vector<1x128xf32>
    %cst_8 = arith.constant 0.000000e+00 : f32
    %32 = vector.broadcast %cst_8 : f32 to vector<1x128xf32>
    %33 = arith.maximumf %31, %32 : vector<1x128xf32>
    %c6 = arith.constant 6 : index
    %34 = memref.load %arg4[%c6] : memref<9xf32, #tpu.memory_space<smem>>
    %35 = vector.broadcast %34 : f32 to vector<1x128xf32>
    %36 = arith.mulf %35, %21 : vector<1x128xf32>
    %c7 = arith.constant 7 : index
    %37 = memref.load %arg4[%c7] : memref<9xf32, #tpu.memory_space<smem>>
    %38 = vector.broadcast %37 : f32 to vector<1x128xf32>
    %39 = arith.mulf %38, %33 : vector<1x128xf32>
    %40 = arith.addf %36, %39 : vector<1x128xf32>
    %c8 = arith.constant 8 : index
    %41 = memref.load %arg4[%c8] : memref<9xf32, #tpu.memory_space<smem>>
    %42 = vector.broadcast %41 : f32 to vector<1x128xf32>
    %43 = arith.addf %40, %42 : vector<1x128xf32>
    %cst_9 = arith.constant -3.000000e+01 : f32
    %44 = vector.broadcast %cst_9 : f32 to vector<1x128xf32>
    %45 = arith.maximumf %43, %44 : vector<1x128xf32>
    %cst_10 = arith.constant 0.000000e+00 : f32
    %46 = vector.broadcast %cst_10 : f32 to vector<1x128xf32>
    %47 = arith.subf %46, %45 : vector<1x128xf32>
    %48 = math.exp %47 : vector<1x128xf32>
    %cst_11 = arith.constant 1.000000e+00 : f32
    %49 = vector.broadcast %cst_11 : f32 to vector<1x128xf32>
    %50 = arith.addf %49, %48 : vector<1x128xf32>
    %51 = tpu.reciprocal %50 {approx = true} : vector<1x128xf32> -> vector<1x128xf32>
    %c0_12 = arith.constant 0 : index
    %c0_13 = arith.constant 0 : index
    %52 = vector.load %arg5[%c0_12, %c0_13] : memref<1x128xf32, #tpu.memory_space<vmem>>, vector<1x128xf32>
    tpu.vector_store %arg5[%c0_12, %c0_13], %51 {strides = array<i32>} : memref<1x128xf32, #tpu.memory_space<vmem>>, vector<1x128xf32>,
    return
  }
  func.func @transform_0(%arg0: i32) -> (i32, i32) {
    %c0_i32 = arith.constant 0 : i32
    %c0_i32_0 = arith.constant 0 : i32
    return %arg0, %c0_i32 : i32, i32
  }
  func.func @transform_1(%arg0: i32) -> (i32, i32) {
    %c0_i32 = arith.constant 0 : i32
    %c0_i32_0 = arith.constant 0 : i32
    %c0_i32_1 = arith.constant 0 : i32
    return %c0_i32, %c0_i32_0 : i32, i32
  }
  func.func @transform_2(%arg0: i32) -> (i32, i32) {
    %c0_i32 = arith.constant 0 : i32
    %c0_i32_0 = arith.constant 0 : i32
    %c0_i32_1 = arith.constant 0 : i32
    return %c0_i32, %c0_i32_0 : i32, i32
  }
  func.func @transform_3(%arg0: i32) -> i32 {
    %c0_i32 = arith.constant 0 : i32
    %c0_i32_0 = arith.constant 0 : i32
    return %c0_i32 : i32
  }
  func.func @transform_4(%arg0: i32) -> (i32, i32) {
    %c0_i32 = arith.constant 0 : i32
    %c0_i32_0 = arith.constant 0 : i32
    return %c0_i32, %arg0 : i32, i32
  }
}

</mosaic_0001>

<bundles_post_ra>
// kernel: tpu_custom_call.1
= control target key start
LH: loop header
LB: loop body
LE: loop exit
PB: predicated region body
PF: predicated region fallthrough
CT: control target
= control target key end

     0   :  { %9 = vsyncpa [#allocation4], 0  ;;  %s762_s0 = inlined_call_operand.vmem [shape: f32[256,32], index: 0, kind: input, shape index: {}]   ;;  %s763_s1 = inlined_call_operand.vmem [shape: f32[2,32], index: 1, kind: input, shape index: {}]   ;;  %s764_s2 = inlined_call_operand.vmem [shape: f32[2,1], index: 2, kind: input, shape index: {}]   ;;  %s765_s3 = inlined_call_operand.vmem [shape: f32[9], index: 3, kind: input, shape index: {}]   ;;  %s766_s4 = inlined_call_operand.hbm [shape: f32[1,256], index: 4, kind: output, shape index: {}]  }
   0x1   :  { %10 = vsyncpa [#allocation3], 0 }
   0x2   :  { %12 = vsyncpa [#allocation3 + $0x1], 0  ;;  %s633_s15 = smov 0   ;;  %s635_s16 = smov 0  }
   0x3   :  { %s637_s17 = smov 0   ;;  %s639_s18 = smov 0  }
   0x4 LB: > { %s654_s19 = sadd.s32 4294967295, %s604_s18   ;;  %s432_s20 = sadd.s32 4294967294, %s604_s18   ;;  %s604_s18 = sphi %s639_s18, %s772_s18   ;;  %s600_s17 = sphi %s637_s17, %s771_s17   ;;  %s596_s16 = sphi %s635_s16, %s770_s16   ;;  %s592_s15 = sphi %s633_s15, %s769_s15  }
   0x5   : > { %s658_s21 = sadd.s32 1, %s604_s18   ;;  %s114_s22 = sadd.s32 1, %s600_s17 }
   0x6   : > { %s111_s23 = ssub.s32 %s604_s18, %s658_s21  ;;  %p124_p0 = scmp.ne.s32.totalorder %s600_s17, %s596_s16 }
   0x7   : > { %p112_p1 = scmp.eq.s32.totalorder %s111_s23, 0  ;;  %p125_p2 = scmp.eq.s32.totalorder %s654_s19, 1 }
   0x8   : > { %p130_p3 = scmp.ne.s32.totalorder %s596_s16, %s592_s15  ;;  %p131_p4 = scmp.eq.s32.totalorder %s432_s20, 1 }
   0x9   : > { %s669_s24 = scalar_select %p112_p1, %s600_s17, %s114_s22  }
   0xa   : > { %p671_p5 = por %p125_p2, %p124_p0  ;;  %p675_p6 = por %p131_p4, %p130_p3 }
   0xb   : > { %p433_p7 = scmp.ge.s32.totalorder %s604_s18, 1  ;;  %p138_p8 = scmp.lt.s32.totalorder %s604_s18, 3 }
   0xc   : > { %p481_p9 = scmp.eq.s32.totalorder %s654_s19, 0  ;;  %s156_s29 = sshll.u32 %s765_s3, 4  ;;  %s157_s29 = int_to_ptr.vmem [resolvable:$true] %s156_s29 }
   0xd   : > { %p139_p10 = pnand %p433_p7, %p138_p8  ;;  %s606_s30 = smov [#allocation2]  }
   0xf   : > { %p473_p11 = pneg %p139_p10  ;;  %178 = sbr.rel (%p139_p10) target bundleno = 264 (0x108), region = 36 }
  0x11   : > { %p474_p12 = pnand %p481_p9, %p473_p11 }
  0x13   : > { %476 = dma.vmem_to_smem (!%p474_p12), %s157_s29, 16, %s606_s30, [#allocation4]  }
  0x14   : > { %583 = dma.done.wait (%p481_p9), [#allocation4], 16  }
  0x15   : > { %585 = vsyncadd (%p481_p9), [#allocation4], 4294967280 }
  0x16   : > { %185 = sfence }
  0x17   : > { %s438_s5 = sshll.u32 %s654_s19, 4  ;;  %vm234_vm0 = vcmask 261120   ;;  %v228_v9 = vld [vmem:[%s764_s2] sm:$0x3]  ;;  %v607_v10 = vmov 0   ;;  %s457_s14 = sld [smem:[#allocation2 + $0x1]] }
  0x18   : > { %p206_p13 = scmp.lt.s32.totalorder %s438_s5, 31  ;;  %518 = vset.pattern.permute.xlu0 %v607_v10  ;;  %v211_v18 = vld [vmem:[%s763_s1] sm:$0x3]  ;;  %s460_s20 = sld [smem:[#allocation2 + $0x3]] }
  0x19   : > { %231 = vperm.xlu0 %518, %v228_v9   ;;  %s307_s22 = sld [smem:[#allocation2]] }
  0x1a   : > { %s774_s5 = smov (!%p206_p13, %s438_s5), 31  ;;  %s459_s23 = sld [smem:[#allocation2 + $0x2]] }
  0x1b   : > { %s439_s6 = sshll.u32 %s774_s5, 3  ;;  %s458_s27 = sld [smem:[#allocation2 + $0x4]] }
  0x1c   : > { %s689_s9 = scalar_lea.vmem %s762_s0, %s439_s6  ;;  %s461_s28 = sld [smem:[#allocation2 + $0x5]] }
  0x1d   : > { %v227_v0 = vld [vmem:[%s689_s9 + $0x78] sm:$0xff]  ;;  %v226_v1 = vld [vmem:[%s689_s9 + $0x70] sm:$0xff]  ;;  %v225_v2 = vld [vmem:[%s689_s9 + $0x68] sm:$0xff]  ;;  %v311_v22 = vstv %s457_s14  ;;  %s462_s29 = sld [smem:[#allocation2 + $0x6]]  ;;  %s203_s6 = sand.u32 1, %s596_s16  }
  0x1e   : > { %440 = vmatpush.xpose.msk.msra.mxu0 %vm234_vm0, %v227_v0  ;;  %v224_v3 = vld [vmem:[%s689_s9 + $0x60] sm:$0xff]  ;;  %v223_v4 = vld [vmem:[%s689_s9 + $0x58] sm:$0xff]  ;;  %v222_v5 = vld [vmem:[%s689_s9 + $0x50] sm:$0xff]  ;;  %v325_v23 = vstv %s460_s20  ;;  %s463_s30 = sld [smem:[#allocation2 + $0x7]]  ;;  %s204_s10 = scalar_lea.vmem [#allocation5], %s203_s6 }
  0x1f   : > { %v221_v6 = vld [vmem:[%s689_s9 + $0x48] sm:$0xff]  ;;  %v220_v7 = vld [vmem:[%s689_s9 + $0x40] sm:$0xff]  ;;  %v219_v8 = vld [vmem:[%s689_s9 + $0x38] sm:$0xff]  ;;  %v308_v25 = vstv %s307_s22  ;;  %s464_s5 = sld [smem:[#allocation2 + $0x8]]  ;;  %s363_s11 = sshll.u32 %s204_s10, 4  ;;  %s364_s11 = int_to_ptr.vmem [resolvable:$true] %s363_s11 }
  0x20   : > { %v218_v11 = vld [vmem:[%s689_s9 + $0x30] sm:$0xff]  ;;  %v217_v12 = vld [vmem:[%s689_s9 + $0x28] sm:$0xff]  ;;  %v216_v13 = vld [vmem:[%s689_s9 + $0x20] sm:$0xff]  ;;  %v322_v26 = vstv %s459_s23  ;;  %s353_s13 = scalar_lea.sflag [#allocation3], %s203_s6 }
  0x21   : > { %v215_v14 = vld [vmem:[%s689_s9 + $0x18] sm:$0xff]  ;;  %v214_v15 = vld [vmem:[%s689_s9 + $0x10] sm:$0xff]  ;;  %v213_v16 = vld [vmem:[%s689_s9 + $0x8] sm:$0xff]  ;;  %v318_v33 = vstv %s458_s27 }
  0x22   : > { %441 = vmatpush.xpose.msk.msra.mxu0 %vm234_vm0, %v226_v1  ;;  %v212_v17 = vld [vmem:[%s689_s9] sm:$0xff]  ;;  %v332_v34 = vstv %s461_s28  ;;  %s361_s9 = scalar_lea.hbm %s766_s4, %s654_s19  ;;  %s558_s19 = scalar_lea.hbm %s766_s4, 2 }
  0x23   : > { %v336_v39 = vstv %s462_s29  ;;  %s365_s12 = sshll.u32 %s361_s9, 4  ;;  %s366_s12 = int_to_ptr.hbm [resolvable:$true] %s365_s12 }
  0x24   : > { %v339_v40 = vstv %s463_s30  ;;  %s552_s14 = sshra.s32 %s366_s12, 4  ;;  %s553_s14 = int_to_ptr.hbm [resolvable:$true] %s552_s14 }
  0x25   : > { %v343_v45 = vstv %s464_s5  ;;  %s554_s20 = scalar_lea.hbm %s553_s14, 1  ;;  %p559_p3 = scmp.lt.s32.totalorder %s553_s14, %s766_s4 }
  0x26   : > { %442 = vmatpush.xpose.msk.msra.mxu0 %vm234_vm0, %v225_v2  ;;  %p555_p0 = scmp.ne.s32.totalorder %s553_s14, %s554_s20  ;;  %p560_p4 = scmp.lt.s32.totalorder %s558_s19, %s554_s20 }
  0x28   : > { %p556_p1 = pnand %p555_p0, %p671_p5  ;;  %p561_p7 = por %p560_p4, %p559_p3 }
  0x2a   : > { %443 = vmatpush.xpose.msk.msra.mxu0 %vm234_vm0, %v224_v3  ;;  %p557_p2 = pneg %p556_p1 }
  0x2c   : > { %p562_p8 = pnand %p561_p7, %p557_p2 }
  0x2e   : > { %444 = vmatpush.xpose.msk.msra.mxu0 %vm234_vm0, %v223_v4 }
  0x32   : > { %445 = vmatpush.xpose.msk.msra.mxu0 %vm234_vm0, %v222_v5 }
  0x36   : > { %446 = vmatpush.xpose.msk.msra.mxu0 %vm234_vm0, %v221_v6 }
  0x3a   : > { %447 = vmatpush.xpose.msk.msra.mxu0 %vm234_vm0, %v220_v7 }
  0x3e   : > { %448 = vmatpush.xpose.msk.msra.mxu0 %vm234_vm0, %v219_v8 }
  0x42   : > { %449 = vmatpush.xpose.msk.msra.mxu0 %vm234_vm0, %v218_v11 }
  0x46   : > { %450 = vmatpush.xpose.msk.msra.mxu0 %vm234_vm0, %v217_v12 }
  0x4a   : > { %451 = vmatpush.xpose.msk.msra.mxu0 %vm234_vm0, %v216_v13 }
  0x4e   : > { %452 = vmatpush.xpose.msk.msra.mxu0 %vm234_vm0, %v215_v14 }
  0x52   : > { %453 = vmatpush.xpose.msk.msra.mxu0 %vm234_vm0, %v214_v15 }
  0x56   : > { %454 = vmatpush.xpose.msk.msra.mxu0 %vm234_vm0, %v213_v16 }
  0x5a   : > { %455 = vmatpush.xpose.msk.msra.mxu0 %vm234_vm0, %v212_v17 }
  0x5d   : > { %456 = vmatmul.msk.f32.vlgmr.msra.gmra.mxu0 %vm234_vm0, %v211_v18 }
  0x8b   : > { %v232_v19 = vpop.permute.xlu0 %231 }
  0xda   : > { %v303_v20 = vpop.f32.mrf.mxu0 }
  0xdb   : > { %v304_v21 = vadd.f32 %v303_v20, %v232_v19 }
  0xdd   : > { %v306_v24 = vmax.f32 %v304_v21, 0.0 }
  0xdf   : > { %v312_v27 = vmul.f32 %v311_v22, %v306_v24  ;;  %v326_v28 = vmul.f32 %v325_v23, %v306_v24  ;;  %v309_v29 = vmul.f32 %v308_v25, %v306_v24  ;;  %v323_v31 = vmul.f32 %v322_v26, %v306_v24 }
  0xe1   : > { %v314_v30 = vrot.slane %v312_v27, 1  ;;  %v328_v32 = vrot.slane %v326_v28, 1 }
  0xe3   : > { %v316_v35 = vadd.f32 %v314_v30, %v309_v29  ;;  %v330_v36 = vadd.f32 %v328_v32, %v323_v31 }
  0xe5   : > { %v319_v37 = vadd.f32 %v318_v33, %v316_v35  ;;  %v333_v38 = vadd.f32 %v332_v34, %v330_v36 }
  0xe7   : > { %v320_v41 = vmax.f32 %v319_v37, 0.0  ;;  %v334_v42 = vmax.f32 %v333_v38, 0.0 }
  0xe9   : > { %v337_v43 = vmul.f32 %v336_v39, %v320_v41  ;;  %v340_v44 = vmul.f32 %v339_v40, %v334_v42 }
  0xeb   : > { %v341_v46 = vadd.f32 %v340_v44, %v337_v43 }
  0xed   : > { %v344_v47 = vadd.f32 %v343_v45, %v341_v46 }
  0xef   : > { %v345_v48 = vmax.f32 %v344_v47, -30.0 }
  0xf1   : > { %v346_v49 = vsub.f32 0.0, %v345_v48 }
  0xf3   : > { %v347_v50 = vmul.f32 1.442695, %v346_v49 }
  0xf5   : > { %519 = vpow2.f32 %v347_v50 }
  0xfb   : > { %v520_v51 = vpop.eup %519 }
  0xfc   : > { %v349_v52 = vadd.f32 1.0, %v520_v51 }
  0xfe   : > { %521 = vrcp.f32 %v349_v52 }
 0x104   : > { %v522_v53 = vpop.eup %521 }
 0x105   : > { %351 = vst [vmem:[%s204_s10] sm:$0x1] %v522_v53 }
 0x106   : > { %565 = shalt.err (!%p562_p8)
}
 0x107   : > { %471 = dma.vmem_to_hbm [thread:$0]  (%p671_p5), %s364_s11, 16, %s366_s12, %s353_s13  }
 0x108 PF: > { %p483_p9 = scmp.ge.s32.totalorder %s604_s18, 2  ;;  %s377_s29 = sand.u32 1, %s592_s15  }
 0x109   : > { %s378_s30 = scalar_lea.sflag [#allocation3], %s377_s29 }
 0x10a   : > { %p478_p10 = pnand %p483_p9, %p675_p6 }
 0x10c   : > { %p479_p11 = pneg %p478_p10 }
 0x10e   : > { %587 = dma.done.wait (%p479_p11), %s378_s30, 16  }
 0x10f   : > { %589 = vsyncadd (%p479_p11), %s378_s30, 4294967280  ;;  %p15_p12 = scmp.ge.s32.totalorder %s658_s21, 4   ;;  %s769_s15 = smov %s596_s16 }
 0x110   : > { %s770_s16 = smov %s600_s17  ;;  %s771_s17 = smov %s669_s24 }
 0x111   : > { %s772_s18 = smov %s658_s21  ;;  %17 = sbr.rel (!%p15_p12) target bundleno = 4 (0x4), region = 76 }
 0x116   :  { %383 = vsyncpa [#allocation3], 1 }
 0x117   :  { %385 = vsyncpa [#allocation3 + $0x1], 1 }
 0x118   :  { %386 = vsyncpa [#allocation4], 1 }
 0x119   :  { %388 = vsyncpa [#allocation4 + $0x1], 1 }

</bundles_post_ra>
